<compile_context>
chip_gen: v7x
topology: tpu7x:2x2x1
jax: 0.10.0
libtpu: 0.0.40
codegen_flags: <defaults>
</compile_context>

<pallas_src>
import dataclasses
import math
from functools import partial

import jax
import jax.numpy as jnp
import numpy as np
from jax.experimental import pallas as pl
from jax.experimental.pallas import tpu as pltpu

LANE = 128
_SUBLANE_BF16 = 16
_TM_MAX = 256                       # M tile cap (128 would also be fine on v5e)
_TARGET_W_TILE_BYTES = 4 * 1024 * 1024   # ~4 MiB bf16 weight tiles (2-8 MiB band)


def _round_up(x, m):
    return ((x + m - 1) // m) * m


def _cdiv(a, b):
    return (a + b - 1) // b


def _vmem_budgets():
    """(vmem_limit_bytes for Mosaic, byte budget for the pipelined tiles)."""
    try:
        cap = int(pltpu.get_tpu_info().vmem_capacity_bytes)
    except Exception:  # conservative: v7x physical VMEM
        cap = 64 * 1024 * 1024
    vmem_limit = (min(cap, 128 * 1024 * 1024) * 3) // 4   # 48 MiB on v7x, 96 MiB v5e/v6e
    tile_budget = (vmem_limit * 2) // 3                   # headroom for Mosaic internals
    return vmem_limit, tile_budget


@dataclasses.dataclass(frozen=True)
class AffinePlan:
    batch: int
    f_in: int
    f_out: int
    tm: int
    tn: int
    tk: int
    batch_p: int
    f_in_p: int
    f_out_p: int
    out_dtype: str
    vmem_limit_bytes: int


def make_affine_plan(batch, f_in, f_out, out_dtype=jnp.float32):
    """Choose tile sizes / padded shapes once per (shape, dtype) configuration."""
    out_dtype = np.dtype(out_dtype)

    # Lane-dense F_out tile; keep >= 2 blocks on the 'parallel' F_out axis when possible
    # so both v7x TensorCores get work.
    f_out_p = _round_up(f_out, LANE)
    tn = 256 if (f_out_p % 256 == 0 and f_out_p // 256 >= 2) else LANE

    # Batch (M) tiling: single full-batch block when small, otherwise <=256-row,
    # sublane-aligned tiles chosen to minimize batch padding.
    if batch <= _TM_MAX:
        tm, batch_p = batch, batch
    else:
        n_i = _cdiv(batch, _TM_MAX)
        tm = _round_up(_cdiv(batch, n_i), _SUBLANE_BF16)
        batch_p = n_i * tm

    vmem_limit, tile_budget = _vmem_budgets()

    # VMEM accounting: double-buffered out blocks + optional acc scratch + bias buffers
    # are fixed; x/w tiles (bf16, double-buffered) scale with tk.
    needs_acc = out_dtype != np.dtype(np.float32)
    fixed = 2 * tm * tn * out_dtype.itemsize + (tm * tn * 4 if needs_acc else 0) + 2 * tn * 4
    per_k = 2 * 2 * (tm + tn)
    tk_vmem = max(LANE, ((tile_budget - fixed) // per_k) // LANE * LANE)
    tk_target = max(4 * LANE, (_TARGET_W_TILE_BYTES // (tn * 2)) // LANE * LANE)
    tk_cap = max(LANE, min(tk_vmem, tk_target))

    # Divisor-aware K tile: bound zero-pad traffic instead of rounding K up to tk.
    k_p128 = _round_up(f_in, LANE)
    if k_p128 <= tk_cap:
        tk = k_p128
    else:
        n_k = _cdiv(k_p128, tk_cap)
        tk = _round_up(_cdiv(k_p128, n_k), LANE)
    f_in_p = _cdiv(k_p128, tk) * tk

    return AffinePlan(batch=batch, f_in=f_in, f_out=f_out, tm=tm, tn=tn, tk=tk,
                      batch_p=batch_p, f_in_p=f_in_p, f_out_p=f_out_p,
                      out_dtype=out_dtype.name, vmem_limit_bytes=int(vmem_limit))


def prepare_affine_params(weight, bias, plan):
    """One-time weight/bias prep (keep the results resident; not part of the hot path).

    weight: (F_out, F_in) -> bf16, zero-padded, stored transposed as (F_in_p, F_out_p).
    bias:   (F_out,) or None -> f32 (1, F_out_p).
    """
    p = plan
    w = jnp.asarray(weight).astype(jnp.bfloat16)
    pad_n = p.f_out_p - p.f_out
    pad_k = p.f_in_p - p.f_in
    if pad_n or pad_k:
        w = jnp.pad(w, ((0, pad_n), (0, pad_k)))
    w_prep = jnp.asarray(w.T)                       # (F_in_p, F_out_p), contiguous, once

    if bias is None:
        b_prep = jnp.zeros((1, p.f_out_p), jnp.float32)
    else:
        b_prep = jnp.asarray(bias, jnp.float32).reshape(1, p.f_out)
        if pad_n:
            b_prep = jnp.pad(b_prep, ((0, 0), (0, pad_n)))
    return jax.device_put(w_prep), jax.device_put(b_prep)


def _affine_kernel_f32(x_ref, w_ref, b_ref, o_ref):
    """f32 output: accumulate directly into the K-resident output block."""
    k = pl.program_id(2)

    @pl.when(k == 0)
    def _():
        o_ref[...] = jnp.broadcast_to(b_ref[...], o_ref.shape)   # bias folded into init

    o_ref[...] += jnp.dot(x_ref[...], w_ref[...], preferred_element_type=jnp.float32)


def _affine_kernel_acc(x_ref, w_ref, b_ref, o_ref, acc_ref):
    """Non-f32 output: f32 accumulator scratch, cast on the last K step."""
    k = pl.program_id(2)

    @pl.when(k == 0)
    def _():
        acc_ref[...] = jnp.broadcast_to(b_ref[...], acc_ref.shape)

    acc_ref[...] += jnp.dot(x_ref[...], w_ref[...], preferred_element_type=jnp.float32)

    @pl.when(k == pl.num_programs(2) - 1)
    def _():
        o_ref[...] = acc_ref[...].astype(o_ref.dtype)


@partial(jax.jit, static_argnames=("plan",))
def affine_apply(x, w_prep, b_prep, plan):
    """Hot path: x (B, C, H, W) with prepared weights -> (B, F_out)."""
    p = plan
    out_dtype = np.dtype(p.out_dtype)
    needs_acc = out_dtype != np.dtype(np.float32)

    x_flat = x.reshape(x.shape[0], -1)
    assert x_flat.shape[1] == p.f_in, (x_flat.shape, p.f_in)
    x_bf = x_flat.astype(jnp.bfloat16)
    pad_b = p.batch_p - p.batch
    pad_k = p.f_in_p - p.f_in
    if pad_b or pad_k:
        x_bf = jnp.pad(x_bf, ((0, pad_b), (0, pad_k)))

    n_i = p.batch_p // p.tm
    n_j = p.f_out_p // p.tn
    n_k = p.f_in_p // p.tk

    kernel = _affine_kernel_acc if needs_acc else _affine_kernel_f32
    scratch = (pltpu.VMEM((p.tm, p.tn), jnp.float32),) if needs_acc else ()

    cost = pl.CostEstimate(
        flops=2 * p.batch_p * p.f_in_p * p.f_out_p,
        transcendentals=0,
        bytes_accessed=(w_prep.size * 2 + x_bf.size * 2
                        + p.batch_p * p.f_out_p * out_dtype.itemsize + b_prep.size * 4),
    )

    out = pl.pallas_call(
        kernel,
        out_shape=jax.ShapeDtypeStruct((p.batch_p, p.f_out_p), out_dtype),
        grid_spec=pltpu.PrefetchScalarGridSpec(
            num_scalar_prefetch=0,
            grid=(n_i, n_j, n_k),                                 # reduction axis last
            in_specs=[
                pl.BlockSpec((p.tm, p.tk), lambda i, j, k: (i, k)),   # x tile
                pl.BlockSpec((p.tk, p.tn), lambda i, j, k: (k, j)),   # weight tile (K,N)
                pl.BlockSpec((1, p.tn), lambda i, j, k: (0, j)),      # bias tile
            ],
            out_specs=pl.BlockSpec((p.tm, p.tn), lambda i, j, k: (i, j)),
            scratch_shapes=scratch,
        ),
        compiler_params=pltpu.CompilerParams(
            dimension_semantics=("parallel", "parallel", "arbitrary"),
            vmem_limit_bytes=p.vmem_limit_bytes,
        ),
        cost_estimate=cost,
    )(x_bf, w_prep, b_prep)

    return out[:p.batch, :p.f_out]


def affine_forward(x, weight, bias=None):
    """Convenience one-shot path (prep + apply). For repeated calls, prepare once."""
    plan = make_affine_plan(x.shape[0], weight.shape[1], weight.shape[0],
                            out_dtype=x.dtype)
    w_prep, b_prep = prepare_affine_params(weight, bias, plan)
    return affine_apply(x, w_prep, b_prep, plan)


def init_affine_params(key, input_features, output_features, bias=True, dtype=jnp.float32):
    """Deterministic init mirroring the PyTorch module (kaiming_normal_, uniform bias)."""
    kw, kb = jax.random.split(key)
    fan_in = input_features
    std = math.sqrt(2.0) / math.sqrt(fan_in)     # gain=sqrt(2) for 'relu', fan_in mode
    weight = std * jax.random.normal(kw, (output_features, input_features), dtype)
    if bias:
        bound = 1.0 / math.sqrt(fan_in)
        b = jax.random.uniform(kb, (output_features,), dtype, minval=-bound, maxval=bound)
    else:
        b = None
    return weight, b


# TODO(synk): backward() / parameter .grad bookkeeping from the PyTorch module is not
# implemented here (forward pass only).

if __name__ == "__main__":
    key = jax.random.PRNGKey(0)
    kx, kp = jax.random.split(key)

    # x: (batch, channel, height, width); input_features = C*H*W
    B, C, H, W = 2, 4, 16, 16
    F_in = C * H * W        # 1024
    F_out = 32

    x = jax.random.normal(kx, (B, C, H, W), jnp.float32)
    weight, b = init_affine_params(kp, F_in, F_out, bias=True)

    # One-time prep outside the hot path, then the jitted apply.
    plan = make_affine_plan(B, F_in, F_out, out_dtype=x.dtype)
    w_prep, b_prep = prepare_affine_params(weight, b, plan)
    out = affine_apply(x, w_prep, b_prep, plan)
    out = jax.block_until_ready(out)
    assert out.shape == (B, F_out), out.shape

    # Reference with matching operand precision (bf16 operands, f32 accumulation).
    x_flat = x.reshape(B, -1)
    ref_bf16 = jnp.dot(x_flat.astype(jnp.bfloat16), weight.astype(jnp.bfloat16).T,
                       preferred_element_type=jnp.float32) + b
    assert jnp.allclose(out, ref_bf16, atol=1e-2, rtol=1e-2), \
        float(jnp.max(jnp.abs(out - ref_bf16)))

    # Sanity check vs the full-f32 reference (bf16 streaming adds small relative noise).
    ref_f32 = x_flat @ weight.T + b
    assert jnp.allclose(out, ref_f32, atol=5e-2, rtol=5e-2), \
        float(jnp.max(jnp.abs(out - ref_f32)))

    print("KERNEL_OK")
</pallas_src>

<mosaic_0001>
module attributes {stable_mosaic.version = 11 : i64} {
  func.func @_affine_kernel_f32(%arg0: i32, %arg1: i32, %arg2: i32, %arg3: memref<2x1024xbf16, #tpu.memory_space<vmem>>, %arg4: memref<1024x128xbf16, #tpu.memory_space<vmem>>, %arg5: memref<1x128xf32, #tpu.memory_space<vmem>>, %arg6: memref<2x128xf32, #tpu.memory_space<vmem>>) attributes {dimension_semantics = [#tpu.dimension_semantics<parallel>, #tpu.dimension_semantics<parallel>, #tpu.dimension_semantics<arbitrary>], iteration_bounds = array<i64: 1, 1, 1>, scalar_prefetch = 0 : i64, scratch_operands = 0 : i64, tpu.core_type = #tpu.core_type<tc>, window_params = [{transform_indices = @transform_0, window_bounds = array<i64: 2, 1024>}, {transform_indices = @transform_1, window_bounds = array<i64: 1024, 128>}, {transform_indices = @transform_2, window_bounds = array<i64: 1, 128>}, {transform_indices = @transform_3, window_bounds = array<i64: 2, 128>}]} {
    %c0_i32 = arith.constant 0 : i32
    %0 = arith.cmpi eq, %arg2, %c0_i32 : i32
    %1 = arith.extui %0 : i1 to i32
    %c0_i32_0 = arith.constant 0 : i32
    %2 = arith.cmpi ne, %1, %c0_i32_0 : i32
    scf.if %2 {
      %c0_8 = arith.constant 0 : index
      %c0_9 = arith.constant 0 : index
      %9 = vector.load %arg5[%c0_8, %c0_9] : memref<1x128xf32, #tpu.memory_space<vmem>>, vector<1x128xf32>
      %10 = vector.shape_cast %9 : vector<1x128xf32> to vector<1x128xf32>
      %11 = vector.broadcast %10 : vector<1x128xf32> to vector<2x128xf32>
      %c0_10 = arith.constant 0 : index
      %c0_11 = arith.constant 0 : index
      %12 = vector.load %arg6[%c0_10, %c0_11] : memref<2x128xf32, #tpu.memory_space<vmem>>, vector<2x128xf32>
      tpu.vector_store %arg6[%c0_10, %c0_11], %11 {strides = array<i32>} : memref<2x128xf32, #tpu.memory_space<vmem>>, vector<2x128xf32>,
    } else {
    }
    %c0 = arith.constant 0 : index
    %c0_1 = arith.constant 0 : index
    %3 = vector.load %arg6[%c0, %c0_1] : memref<2x128xf32, #tpu.memory_space<vmem>>, vector<2x128xf32>
    %c0_2 = arith.constant 0 : index
    %c0_3 = arith.constant 0 : index
    %4 = vector.load %arg3[%c0_2, %c0_3] : memref<2x1024xbf16, #tpu.memory_space<vmem>>, vector<2x1024xbf16>
    %c0_4 = arith.constant 0 : index
    %c0_5 = arith.constant 0 : index
    %5 = vector.load %arg4[%c0_4, %c0_5] : memref<1024x128xbf16, #tpu.memory_space<vmem>>, vector<1024x128xbf16>
    %cst = arith.constant dense<0.000000e+00> : vector<2x128xf32>
    %6 = tpu.matmul %4, %5, %cst {dimension_numbers = #tpu.dot_dimension_numbers<[1], [0], [0], [1], [0, 0, 1, 1], [], []>} : vector<2x1024xbf16>, vector<1024x128xbf16>, vector<2x128xf32> -> vector<2x128xf32>
    %7 = arith.addf %3, %6 : vector<2x128xf32>
    %c0_6 = arith.constant 0 : index
    %c0_7 = arith.constant 0 : index
    %8 = vector.load %arg6[%c0_6, %c0_7] : memref<2x128xf32, #tpu.memory_space<vmem>>, vector<2x128xf32>
    tpu.vector_store %arg6[%c0_6, %c0_7], %7 {strides = array<i32>} : memref<2x128xf32, #tpu.memory_space<vmem>>, vector<2x128xf32>,
    return
  }
  func.func @transform_0(%arg0: i32, %arg1: i32, %arg2: i32) -> (i32, i32) {
    %c0_i32 = arith.constant 0 : i32
    return %arg0, %arg2 : i32, i32
  }
  func.func @transform_1(%arg0: i32, %arg1: i32, %arg2: i32) -> (i32, i32) {
    %c0_i32 = arith.constant 0 : i32
    return %arg2, %arg1 : i32, i32
  }
  func.func @transform_2(%arg0: i32, %arg1: i32, %arg2: i32) -> (i32, i32) {
    %c0_i32 = arith.constant 0 : i32
    %c0_i32_0 = arith.constant 0 : i32
    return %c0_i32, %arg1 : i32, i32
  }
  func.func @transform_3(%arg0: i32, %arg1: i32, %arg2: i32) -> (i32, i32) {
    %c0_i32 = arith.constant 0 : i32
    return %arg0, %arg1 : i32, i32
  }
}

</mosaic_0001>

<bundles_post_ra>
// kernel: affine_apply.1
= control target key start
LH: loop header
LB: loop body
LE: loop exit
PB: predicated region body
PF: predicated region fallthrough
CT: control target
= control target key end

     0   :  { %8 = vsyncpa [#allocation3], 0  ;;  %s1130_s0 = inlined_call_operand.vmem [shape: bf16[2,1024], index: 0, kind: input, shape index: {}]   ;;  %s1131_s1 = inlined_call_operand.hbm [shape: bf16[1024,128], index: 1, kind: input, shape index: {}]   ;;  %s1132_s2 = inlined_call_operand.vmem [shape: f32[1,128], index: 2, kind: input, shape index: {}]   ;;  %s1133_s3 = inlined_call_operand.hbm [shape: f32[2,128], index: 3, kind: output, shape index: {}]  }
   0x1   :  { %9 = vsyncpa [#allocation4], 0  ;;  %s1062_s12 = smov [#allocation2]   ;;  %s1014_s16 = scalar_lea.hbm %s1131_s1, 8192 }
   0x2   :  { %s17_s13 = sshll.u32 %s1062_s12, 4  ;;  %p1015_p0 = scmp.ne.s32.totalorder %s1131_s1, %s1014_s16  ;;  %s18_s13 = int_to_ptr.vmem [resolvable:$true] %s17_s13 }
   0x3   :  { %p1018_p1 = scmp.lt.u32.totalorder %s1014_s16, %s1131_s1 }
   0x5   :  { %p1020_p2 = pnand %p1018_p1, %p1015_p0 }
   0x7   :  { %1023 = shalt.err (!%p1020_p2)
}
   0x8   :  { %s1024_s21 = scalar_lea.vmem %s18_s13, 8192  ;;  %p1029_p4 = scmp.lt.s32.totalorder %s18_s13, %s18_s13 }
   0x9   :  { %p1025_p3 = scmp.ne.s32.totalorder %s18_s13, %s1024_s21  ;;  %p1030_p5 = scmp.lt.s32.totalorder %s1024_s21, %s1024_s21 }
   0xb   :  { %p1031_p6 = por %p1030_p5, %p1029_p4 }
   0xd   :  { %p1032_p7 = pnand %p1031_p6, %p1025_p3 }
   0xf   :  { %1035 = shalt.err (!%p1032_p7)
}
  0x10   :  { %s1063_s22 = smov 64   ;;  %s1064_s23 = smov 4  }
  0x11   :  { %23 = dma.hbm_to_vmem [thread:$0]  %s1131_s1, 8192, %s18_s13, [#allocation3], %s1063_s22, %s1063_s22, %s1064_s23  }
  0x12   :  { %1058 = dma.done.wait [#allocation3], 8192  }
  0x13   :  { %1059 = vsyncadd [#allocation3], 4294959104  ;;  %v949_v0 = vld [vmem:[#allocation2 + $0x40] sm:$0xff]   ;;  %v953_v4 = vld [vmem:[#allocation2 + $0x48] sm:$0xff]   ;;  %v1065_v22 = vmov 1966171168   ;;  %v177_v24 = vlaneseq }
  0x14   :  { %v950_v1 = vld [vmem:[#allocation2 + $0xc0] sm:$0xff]   ;;  %856 = vmatprep.subr.bf16.mxu0 %v949_v0  ;;  %v954_v5 = vld [vmem:[#allocation2 + $0xc8] sm:$0xff]   ;;  %v957_v8 = vld [vmem:[#allocation2 + $0x50] sm:$0xff]   ;;  %v175_v23 = vunpack.c.l.s4 %v1065_v22 }
  0x15   :  { %v951_v2 = vld [vmem:[#allocation2] sm:$0xff]   ;;  %878 = vmatprep.subr.bf16.mxu1 %v950_v1  ;;  %v955_v6 = vld [vmem:[#allocation2 + $0x8] sm:$0xff]   ;;  %v958_v9 = vld [vmem:[#allocation2 + $0xd0] sm:$0xff]   ;;  %v178_v30 = vshrl.u32 %v177_v24, 7 }
  0x16   :  { %v952_v3 = vld [vmem:[#allocation2 + $0x80] sm:$0xff]   ;;  %857 = vmatpush3.bf16.msra.mxu0 %v951_v2  ;;  %v956_v7 = vld [vmem:[#allocation2 + $0x88] sm:$0xff]   ;;  %v959_v10 = vld [vmem:[#allocation2 + $0x10] sm:$0xff]   ;;  %v176_v29 = vunpack.c.0.s8 %v175_v23 }
  0x17   :  { %879 = vmatpush3.bf16.msra.mxu1 %v952_v3  ;;  %858 = vmatprep.subr.bf16.mxu0 %v953_v4  ;;  %v960_v11 = vld [vmem:[#allocation2 + $0x90] sm:$0xff]   ;;  %v961_v12 = vld [vmem:[#allocation2 + $0x58] sm:$0xff]   ;;  %v965_v16 = vld [vmem:[#allocation2 + $0x60] sm:$0xff]  }
  0x18   :  { %880 = vmatprep.subr.bf16.mxu1 %v954_v5  ;;  %v962_v13 = vld [vmem:[#allocation2 + $0xd8] sm:$0xff]   ;;  %v966_v17 = vld [vmem:[#allocation2 + $0xe0] sm:$0xff]   ;;  %v969_v20 = vld [vmem:[#allocation2 + $0x68] sm:$0xff]   ;;  %v1099_v35 = vsub.s32 %v176_v29, %v178_v30 }
  0x19   :  { %v963_v14 = vld [vmem:[#allocation2 + $0x18] sm:$0xff]   ;;  %v967_v18 = vld [vmem:[#allocation2 + $0x20] sm:$0xff]   ;;  %v970_v21 = vld [vmem:[#allocation2 + $0xe8] sm:$0xff]  }
  0x1a   :  { %859 = vmatpush3.bf16.msra.mxu0 %v955_v6  ;;  %v964_v15 = vld [vmem:[#allocation2 + $0x98] sm:$0xff]   ;;  %v968_v19 = vld [vmem:[#allocation2 + $0xa0] sm:$0xff]   ;;  %v971_v25 = vld [vmem:[#allocation2 + $0x28] sm:$0xff]  }
  0x1b   :  { %881 = vmatpush3.bf16.msra.mxu1 %v956_v7  ;;  %860 = vmatprep.subr.bf16.mxu0 %v957_v8  ;;  %v972_v26 = vld [vmem:[#allocation2 + $0xa8] sm:$0xff]   ;;  %v973_v27 = vld [vmem:[#allocation2 + $0x70] sm:$0xff]   ;;  %v977_v33 = vld [vmem:[#allocation2 + $0x78] sm:$0xff]  }
  0x1c   :  { %882 = vmatprep.subr.bf16.mxu1 %v958_v9  ;;  %v974_v28 = vld [vmem:[#allocation2 + $0xf0] sm:$0xff]   ;;  %v978_v34 = vld [vmem:[#allocation2 + $0xf8] sm:$0xff]   ;;  %v43_v38 = vld [vmem:[%s1130_s0] sm:$0xff] }
  0x1d   :  { %v975_v31 = vld [vmem:[#allocation2 + $0x30] sm:$0xff]   ;;  %v979_v36 = vld [vmem:[#allocation2 + $0x38] sm:$0xff]   ;;  %v173_v39 = vcombine.high %v43_v38, %v43_v38  ;;  %v180_v40 = vrot.slane %v43_v38, %v1099_v35  ;;  %v982_v41 = vld [vmem:[#allocation2 + $0x140] sm:$0xff]  }
  0x1e   :  { %861 = vmatpush3.bf16.msra.mxu0 %v959_v10  ;;  %v976_v32 = vld [vmem:[#allocation2 + $0xb0] sm:$0xff]   ;;  %v980_v37 = vld [vmem:[#allocation2 + $0xb8] sm:$0xff]   ;;  %v983_v42 = vld [vmem:[#allocation2 + $0x1c0] sm:$0xff]  }
  0x1f   :  { %883 = vmatpush3.bf16.msra.mxu1 %v960_v11  ;;  %862 = vmatprep.subr.bf16.mxu0 %v961_v12  ;;  %v188_v43 = vcombine.high %v180_v40, %v180_v40  ;;  %v196_v44 = vrot.slane %v180_v40, %v1099_v35  ;;  %v1107_v45 = vrot.slane %v173_v39, %v1099_v35  ;;  %v984_v47 = vld [vmem:[#allocation2 + $0x100] sm:$0xff]   ;;  %v986_v50 = vld [vmem:[#allocation2 + $0x148] sm:$0xff]   ;;  %v990_v57 = vld [vmem:[#allocation2 + $0x150] sm:$0xff]  }
  0x20   :  { %884 = vmatprep.subr.bf16.mxu1 %v962_v13  ;;  %v985_v52 = vld [vmem:[#allocation2 + $0x180] sm:$0xff]   ;;  %v987_v54 = vld [vmem:[#allocation2 + $0x1c8] sm:$0xff]   ;;  %v991_v59 = vld [vmem:[#allocation2 + $0x1d0] sm:$0xff]  }
  0x21   :  { %v210_v46 = vrot.slane %v188_v43, %v1099_v35  ;;  %v189_v48 = vcombine.high %v1107_v45, %v1107_v45  ;;  %v218_v49 = vcombine.high %v196_v44, %v196_v44  ;;  %v988_v55 = vld [vmem:[#allocation2 + $0x108] sm:$0xff]   ;;  %v992_v60 = vld [vmem:[#allocation2 + $0x110] sm:$0xff]   ;;  %v994_v61 = vld [vmem:[#allocation2 + $0x158] sm:$0xff]  }
  0x22   :  { %863 = vmatpush3.bf16.msra.mxu0 %v963_v14  ;;  %v989_v58 = vld [vmem:[#allocation2 + $0x188] sm:$0xff]   ;;  %v993_v62 = vld [vmem:[#allocation2 + $0x190] sm:$0xff]   ;;  %v995_v63 = vld [vmem:[#allocation2 + $0x1d8] sm:$0xff]  }
  0x23   :  { %885 = vmatpush3.bf16.msra.mxu1 %v964_v15  ;;  %864 = vmatprep.subr.bf16.mxu0 %v965_v16  ;;  %v220_v51 = vcombine.high %v210_v46, %v210_v46  ;;  %v217_v53 = vrot.slane %v189_v48, %v1099_v35  ;;  %v996_v0 = vld [vmem:[#allocation2 + $0x118] sm:$0xff]   ;;  %v998_v1 = vld [vmem:[#allocation2 + $0x160] sm:$0xff]   ;;  %v1002_v5 = vld [vmem:[#allocation2 + $0x168] sm:$0xff]  }
  0x24   :  { %886 = vmatprep.subr.bf16.mxu1 %v966_v17  ;;  %646 = vmatprep.mubr.bf16.mxu0 %v210_v46  ;;  %v997_v2 = vld [vmem:[#allocation2 + $0x198] sm:$0xff]   ;;  %v999_v3 = vld [vmem:[#allocation2 + $0x1e0] sm:$0xff]   ;;  %v1003_v7 = vld [vmem:[#allocation2 + $0x1e8] sm:$0xff]   ;;  %v203_v17 = vrot.slane %v1107_v45, %v1099_v35 }
  0x25   :  { %686 = vmatprep.mubr.bf16.mxu1 %v220_v51  ;;  %v221_v56 = vcombine.high %v217_v53, %v217_v53  ;;  %v1000_v4 = vld [vmem:[#allocation2 + $0x120] sm:$0xff]   ;;  %v1004_v8 = vld [vmem:[#allocation2 + $0x128] sm:$0xff]   ;;  %v1006_v9 = vld [vmem:[#allocation2 + $0x170] sm:$0xff]  }
  0x26   :  { %865 = vmatpush3.bf16.msra.mxu0 %v967_v18  ;;  %v1001_v6 = vld [vmem:[#allocation2 + $0x1a0] sm:$0xff]   ;;  %v1005_v10 = vld [vmem:[#allocation2 + $0x1a8] sm:$0xff]   ;;  %v1007_v11 = vld [vmem:[#allocation2 + $0x1f0] sm:$0xff]  }
  0x27   :  { %887 = vmatpush3.bf16.msra.mxu1 %v968_v19  ;;  %866 = vmatprep.subr.bf16.mxu0 %v969_v20  ;;  %v1008_v12 = vld [vmem:[#allocation2 + $0x130] sm:$0xff]   ;;  %v1010_v13 = vld [vmem:[#allocation2 + $0x178] sm:$0xff]   ;;  %v219_v19 = vcombine.high %v203_v17, %v203_v17  ;;  %v791_v20 = vld [vmem:[%s1132_s2] ss:$0 sm:$0xff]  ;;  %s1066_s2 = smov [#allocation5]  }
  0x28   :  { %888 = vmatprep.subr.bf16.mxu1 %v970_v21  ;;  %v1009_v14 = vld [vmem:[#allocation2 + $0x1b0] sm:$0xff]   ;;  %v1011_v15 = vld [vmem:[#allocation2 + $0x1f8] sm:$0xff]   ;;  %41 = vst [vmem:[#allocation5] sm:$0x3] %v791_v20  ;;  %s782_s28 = sshll.u32 %s1066_s2, 4  ;;  %s783_s28 = int_to_ptr.vmem [resolvable:$true] %s782_s28 }
  0x29   :  { %v1012_v16 = vld [vmem:[#allocation2 + $0x138] sm:$0xff]   ;;  %s1036_s29 = scalar_lea.vmem %s783_s28, 32  ;;  %p1041_p9 = scmp.lt.s32.totalorder %s783_s28, %s783_s28 }
  0x2a   :  { %867 = vmatpush3.bf16.msra.mxu0 %v971_v25  ;;  %v1013_v18 = vld [vmem:[#allocation2 + $0x1b8] sm:$0xff]   ;;  %p1037_p8 = scmp.ne.s32.totalorder %s783_s28, %s1036_s29  ;;  %p1042_p10 = scmp.lt.s32.totalorder %s1036_s29, %s1036_s29 }
  0x2b   :  { %889 = vmatpush3.bf16.msra.mxu1 %v972_v26  ;;  %868 = vmatprep.subr.bf16.mxu0 %v973_v27 }
  0x2c   :  { %890 = vmatprep.subr.bf16.mxu1 %v974_v28  ;;  %p1043_p11 = por %p1042_p10, %p1041_p9 }
  0x2e   :  { %869 = vmatpush3.bf16.msra.mxu0 %v975_v31  ;;  %p1044_p12 = pnand %p1043_p11, %p1037_p8 }
  0x2f   :  { %891 = vmatpush3.bf16.msra.mxu1 %v976_v32  ;;  %870 = vmatprep.subr.bf16.mxu0 %v977_v33 }
  0x30   :  { %892 = vmatprep.subr.bf16.mxu1 %v978_v34 }
  0x32   :  { %871 = vmatpush3.bf16.msra.mxu0 %v979_v36 }
  0x33   :  { %893 = vmatpush3.bf16.msra.mxu1 %v980_v37  ;;  %900 = vmatprep.subr.bf16.mxu0 %v982_v41 }
  0x34   :  { %922 = vmatprep.subr.bf16.mxu1 %v983_v42  ;;  %v42_v42 = vld [vmem:[#allocation5] sm:$0x3] }
  0x35   :  { %647 = vmatmul.mubr.bf16.vlgmr.msra.gmra.mrb[0].mxu0 %v196_v44 }
  0x36   :  { %901 = vmatpush3.bf16.msra.mxu0 %v984_v47  ;;  %687 = vmatmul.mubr.bf16.vlgmr.msra.gmra.mrb[0].mxu1 %v218_v49 }
  0x37   :  { %902 = vmatprep.subr.bf16.mxu0 %v986_v50  ;;  %923 = vmatpush3.bf16.msra.mxu1 %v985_v52 }
  0x38   :  { %726 = vmatprep.mubr.bf16.mxu0 %v217_v53  ;;  %924 = vmatprep.subr.bf16.mxu1 %v987_v54 }
  0x39   :  { %766 = vmatprep.mubr.bf16.mxu1 %v221_v56 }
  0x3a   :  { %903 = vmatpush3.bf16.msra.mxu0 %v988_v55 }
  0x3b   :  { %904 = vmatprep.subr.bf16.mxu0 %v990_v57  ;;  %925 = vmatpush3.bf16.msra.mxu1 %v989_v58 }
  0x3c   :  { %926 = vmatprep.subr.bf16.mxu1 %v991_v59 }
  0x3e   :  { %905 = vmatpush3.bf16.msra.mxu0 %v992_v60 }
  0x3f   :  { %906 = vmatprep.subr.bf16.mxu0 %v994_v61  ;;  %927 = vmatpush3.bf16.msra.mxu1 %v993_v62 }
  0x40   :  { %928 = vmatprep.subr.bf16.mxu1 %v995_v63 }
  0x42   :  { %907 = vmatpush3.bf16.msra.mxu0 %v996_v0 }
  0x43   :  { %908 = vmatprep.subr.bf16.mxu0 %v998_v1  ;;  %929 = vmatpush3.bf16.msra.mxu1 %v997_v2 }
  0x44   :  { %930 = vmatprep.subr.bf16.mxu1 %v999_v3 }
  0x46   :  { %909 = vmatpush3.bf16.msra.mxu0 %v1000_v4 }
  0x47   :  { %910 = vmatprep.subr.bf16.mxu0 %v1002_v5  ;;  %931 = vmatpush3.bf16.msra.mxu1 %v1001_v6 }
  0x48   :  { %932 = vmatprep.subr.bf16.mxu1 %v1003_v7 }
  0x4a   :  { %911 = vmatpush3.bf16.msra.mxu0 %v1004_v8 }
  0x4b   :  { %912 = vmatprep.subr.bf16.mxu0 %v1006_v9  ;;  %933 = vmatpush3.bf16.msra.mxu1 %v1005_v10 }
  0x4c   :  { %934 = vmatprep.subr.bf16.mxu1 %v1007_v11 }
  0x4e   :  { %913 = vmatpush3.bf16.msra.mxu0 %v1008_v12 }
  0x4f   :  { %914 = vmatprep.subr.bf16.mxu0 %v1010_v13  ;;  %935 = vmatpush3.bf16.msra.mxu1 %v1009_v14 }
  0x50   :  { %936 = vmatprep.subr.bf16.mxu1 %v1011_v15 }
  0x52   :  { %915 = vmatpush3.bf16.msra.mxu0 %v1012_v16 }
  0x53   :  { %937 = vmatpush3.bf16.msra.mxu1 %v1013_v18 }
  0x55   :  { %727 = vmatmul.mubr.bf16.vlgmr.msra.gmra.mrb[4].mxu0 %v203_v17 }
  0x56   :  { %767 = vmatmul.mubr.bf16.vlgmr.msra.gmra.mrb[4].mxu1 %v219_v19 }
 0x108   :  { %v872_v21 = vpop.f32.mrb[0].mxu0 }
 0x109   :  { %v873_v22 = vpop.f32.mrb[1].mxu0  ;;  %v894_v23 = vpop.f32.mrb[0].mxu1 }
 0x10a   :  { %v874_v24 = vadd.f32 %v873_v22, %v872_v21  ;;  %v875_v25 = vpop.f32.mrb[2].mxu0  ;;  %v895_v26 = vpop.f32.mrb[1].mxu1 }
 0x10b   :  { %v876_v27 = vpop.f32.mrb[3].mxu0  ;;  %v896_v28 = vadd.f32 %v895_v26, %v894_v23  ;;  %v897_v29 = vpop.f32.mrb[2].mxu1 }
 0x10c   :  { %v898_v30 = vpop.f32.mrb[3].mxu1 }
 0x10d   :  { %v689_v31 = vadd.f32 %v896_v28, %v874_v24 }
 0x128   :  { %v916_v32 = vpop.f32.mrb[4].mxu0 }
 0x129   :  { %v917_v33 = vpop.f32.mrb[5].mxu0  ;;  %v938_v34 = vpop.f32.mrb[4].mxu1 }
 0x12a   :  { %v918_v35 = vadd.f32 %v917_v33, %v916_v32  ;;  %v919_v36 = vpop.f32.mrb[6].mxu0  ;;  %v939_v37 = vpop.f32.mrb[5].mxu1 }
 0x12b   :  { %v920_v38 = vpop.f32.mrb[7].mxu0  ;;  %v940_v40 = vadd.f32 %v939_v37, %v938_v34  ;;  %v941_v41 = vpop.f32.mrb[6].mxu1 }
 0x12c   :  { %v729_v39 = vadd.f32 %v918_v35, %v689_v31  ;;  %v942_v43 = vpop.f32.mrb[7].mxu1 }
 0x12e   :  { %v769_v44 = vadd.f32 %v940_v40, %v729_v39 }
 0x130   :  { %v774_v45 = vadd.f32 %v769_v44, %v42_v42 }
 0x132   :  { %775 = vst [vmem:[#allocation5] sm:$0x3] %v774_v45 }
 0x133   :  { %1047 = shalt.err (!%p1044_p12)
}
 0x134   :  { %s1048_s5 = scalar_lea.hbm %s1133_s3, 32 }
 0x135   :  { %p1049_p13 = scmp.ne.s32.totalorder %s1133_s3, %s1048_s5  ;;  %p1052_p0 = scmp.lt.u32.totalorder %s1048_s5, %s1133_s3 }
 0x137   :  { %p1054_p1 = pnand %p1052_p0, %p1049_p13 }
 0x139   :  { %1057 = shalt.err (!%p1054_p1)
}
 0x13a   :  { %785 = dma.vmem_to_hbm [thread:$0]  %s783_s28, 32, %s1133_s3, [#allocation4]  }
 0x13b   :  { %1060 = dma.done.wait [#allocation4], 32  }
 0x13c   :  { %1061 = vsyncadd [#allocation4], 4294967264 }
 0x13d   :  { %789 = vsyncpa [#allocation3], 1 }
 0x13e   :  { %790 = vsyncpa [#allocation4], 1 }

</bundles_post_ra>
